<compile_context>
chip_gen: v6e
topology: v6e:2x2x1
jax: 0.10.0
libtpu: 0.0.40
codegen_flags: <defaults>
</compile_context>

<pallas_src>
import functools

import jax
import jax.numpy as jnp
from jax.experimental import pallas as pl
from jax.experimental.pallas import tpu as pltpu


# ---------------------------------------------------------------------------
# Kernel: one SAGEConv layer (mean aggregation, two fused dots, optional ReLU)
# ---------------------------------------------------------------------------
def _sage_layer_kernel(a_ref, xk_ref, xi_ref, invdeg_ref, wl_ref, wr_ref,
                       b_ref, out_ref, acc_ref, *, relu, tk, x_resident):
    """Grid = (row tiles, reduction tiles over neighbor columns)."""
    k = pl.program_id(1)

    @pl.when(k == 0)
    def _init():
        acc_ref[...] = jnp.zeros_like(acc_ref)

    # Neighbor rows for this reduction step: either a slice of the VMEM-resident
    # X or the streamed (tk, f_pad) block.
    if x_resident:
        start = pl.multiple_of(k * tk, tk)
        xk = xk_ref[pl.ds(start, tk), :]
    else:
        xk = xk_ref[...]

    # Accumulate un-normalized neighbor sum: sum_k A01[i, k_blk] @ X[k_blk, :].
    # A is stored int8 (0/1 edge counts); upcast on the VPU, accumulate f32.
    acc_ref[...] += jnp.dot(a_ref[...].astype(jnp.bfloat16), xk,
                            preferred_element_type=jnp.float32)

    @pl.when(k == pl.num_programs(1) - 1)
    def _finalize():
        # Mean = f32 post-scale by 1/deg (exact w.r.t. integer-count adjacency).
        agg = (acc_ref[...] * invdeg_ref[...]).astype(xi_ref.dtype)
        # SAGEConv: out = mean_neighbors @ W_l + x_root @ W_r + b
        z = (jnp.dot(agg, wl_ref[...], preferred_element_type=jnp.float32)
             + jnp.dot(xi_ref[...], wr_ref[...],
                       preferred_element_type=jnp.float32)
             + b_ref[...])
        if relu:
            z = jnp.maximum(z, 0.0)
        out_ref[...] = z.astype(out_ref.dtype)


def _sage_layer(A, x, inv_deg, wl, wr, b, *, relu, out_dtype, tm, tk,
                x_resident, vmem_limit):
    n_pad, f_pad = x.shape
    h_pad = wl.shape[1]
    grid = (n_pad // tm, n_pad // tk)

    kernel = functools.partial(_sage_layer_kernel, relu=relu, tk=tk,
                               x_resident=x_resident)

    if x_resident:
        # Full X resident in VMEM, constant block index -> DMA'd once per layer.
        xk_spec = pl.BlockSpec((n_pad, f_pad), lambda i, k: (0, 0))
    else:
        # Stream (tk, f_pad) neighbor-row chunks along the reduction axis.
        xk_spec = pl.BlockSpec((tk, f_pad), lambda i, k: (k, 0))

    return pl.pallas_call(
        kernel,
        out_shape=jax.ShapeDtypeStruct((n_pad, h_pad), out_dtype),
        grid_spec=pltpu.PrefetchScalarGridSpec(
            num_scalar_prefetch=0,
            grid=grid,
            in_specs=[
                pl.BlockSpec((tm, tk), lambda i, k: (i, k)),       # A01 tile (int8)
                xk_spec,                                           # X (reduction)
                pl.BlockSpec((tm, f_pad), lambda i, k: (i, 0)),    # X root rows
                pl.BlockSpec((tm, 1), lambda i, k: (i, 0)),        # 1/deg (f32)
                pl.BlockSpec((f_pad, h_pad), lambda i, k: (0, 0)), # W_l (bf16)
                pl.BlockSpec((f_pad, h_pad), lambda i, k: (0, 0)), # W_r (bf16)
                pl.BlockSpec((1, h_pad), lambda i, k: (0, 0)),     # bias (f32)
            ],
            out_specs=pl.BlockSpec((tm, h_pad), lambda i, k: (i, 0)),
            scratch_shapes=[pltpu.VMEM((tm, f_pad), jnp.float32)],  # agg accumulator
        ),
        compiler_params=pltpu.CompilerParams(
            dimension_semantics=("parallel", "arbitrary"),
            vmem_limit_bytes=vmem_limit,
        ),
    )(A, x, x, inv_deg, wl, wr, b)   # X passed twice: 7 inputs == 7 in_specs


# ---------------------------------------------------------------------------
# Wrapper: adjacency/degree build, padding, tile selection, two layers
# ---------------------------------------------------------------------------
def _round_up(v, m):
    return (v + m - 1) // m * m


def _tiles_for(n):
    # Bigger, fatter grid steps amortize the ~0.35 us/step overhead and reach
    # the HBM roofline on the A stream.  Keep tm | tk.  On the large-graph
    # paths n_pad//tm >= 4 (even), so the 'parallel' row axis splits across
    # both v7x TensorCores.
    if n <= 1024:
        return 128, 128
    if n <= 8192:
        return 256, 1024
    return 512, 2048


def graphsage_forward(x, edge_index, params):
    """x: (N, F_in) float32; edge_index: (2, E) int32 with row0=src, row1=dst."""
    N, F_in = x.shape
    H = params["w1l"].shape[1]

    tm, tk = _tiles_for(N)
    n_pad = _round_up(max(N, tk), tk)          # tk is a multiple of tm
    f_pad = _round_up(F_in, 128)               # lane-dense features
    h_pad = _round_up(H, 128)                  # lane-dense hidden/output

    src, dst = edge_index[0], edge_index[1]

    # Adjacency built directly at the padded shape in its HBM storage dtype
    # (int8; exact for multi-edge counts <= 127) -> no extra O(N^2) f32 pass.
    A_p = jnp.zeros((n_pad, n_pad), jnp.int8).at[dst, src].add(1)
    # In-degree via an edge segment-sum (no dense row reduction).
    deg = jnp.zeros((N,), jnp.float32).at[dst].add(1.0)
    inv_deg = jnp.where(deg > 0, 1.0 / jnp.maximum(deg, 1.0), 0.0)
    invdeg_p = jnp.zeros((n_pad, 1), jnp.float32).at[:N, 0].set(inv_deg)

    x_p = jnp.zeros((n_pad, f_pad), jnp.bfloat16).at[:N, :F_in].set(
        x.astype(jnp.bfloat16))

    def pad_w(w, in_pad):
        return jnp.zeros((in_pad, h_pad), jnp.bfloat16).at[
            :w.shape[0], :w.shape[1]].set(w.astype(jnp.bfloat16))

    w1l, w1r = pad_w(params["w1l"], f_pad), pad_w(params["w1r"], f_pad)
    b1 = jnp.zeros((1, h_pad), jnp.float32).at[0, :H].set(params["b1"])
    w2l, w2r = pad_w(params["w2l"], h_pad), pad_w(params["w2r"], h_pad)
    b2 = jnp.zeros((1, h_pad), jnp.float32).at[0, :H].set(params["b2"])

    # X residency: conservative 8 MiB budget keeps the double-buffered copy
    # well inside v7x's 64 MiB VMEM; bigger graphs fall back to streaming.
    def resident(f):
        return n_pad * f * 2 <= 8 * 1024 * 1024

    def vmem_limit(f, x_res):
        est = (2 * tm * tk                                   # A tiles (int8), 2-buf
               + (2 * n_pad * f * 2 if x_res else 2 * tk * f * 2)  # X reduction
               + 2 * tm * f * 2                              # X root tiles
               + 2 * 2 * f * h_pad * 2                       # W_l + W_r
               + 2 * tm * h_pad * 4                          # output tiles
               + tm * f * 4                                  # f32 accumulator
               + 64 * 1024)                                  # bias / misc
        # Explicit limit: v5e's scoped default is only 16 MiB; stay <= 56 MiB
        # so the same setting is valid under v7x's 64 MiB physical VMEM.
        return int(min(max(3 * est, 32 * 1024 * 1024), 56 * 1024 * 1024))

    r1, r2 = resident(f_pad), resident(h_pad)
    # Layer 1: SAGEConv + ReLU, x1 kept bf16 (halves HBM traffic into layer 2).
    x1 = _sage_layer(A_p, x_p, invdeg_p, w1l, w1r, b1,
                     relu=True, out_dtype=jnp.bfloat16, tm=tm, tk=tk,
                     x_resident=r1, vmem_limit=vmem_limit(f_pad, r1))
    # Layer 2: SAGEConv, f32 output.
    out = _sage_layer(A_p, x1, invdeg_p, w2l, w2r, b2,
                      relu=False, out_dtype=jnp.float32, tm=tm, tk=tk,
                      x_resident=r2, vmem_limit=vmem_limit(h_pad, r2))
    return out[:N, :H]


# ---------------------------------------------------------------------------
# Params / reference
# ---------------------------------------------------------------------------
def init_params(key, f_in, hidden):
    ks = jax.random.split(key, 6)
    s_in = 1.0 / jnp.sqrt(f_in)
    s_h = 1.0 / jnp.sqrt(hidden)
    return {
        # layer 1: lin_l (neighbors, carries the bias) and lin_r (root)
        "w1l": jax.random.uniform(ks[0], (f_in, hidden), jnp.float32, -s_in, s_in),
        "w1r": jax.random.uniform(ks[1], (f_in, hidden), jnp.float32, -s_in, s_in),
        "b1":  jax.random.uniform(ks[2], (hidden,), jnp.float32, -s_in, s_in),
        # layer 2
        "w2l": jax.random.uniform(ks[3], (hidden, hidden), jnp.float32, -s_h, s_h),
        "w2r": jax.random.uniform(ks[4], (hidden, hidden), jnp.float32, -s_h, s_h),
        "b2":  jax.random.uniform(ks[5], (hidden,), jnp.float32, -s_h, s_h),
    }


def _reference(x, edge_index, params):
    """Plain-JAX reference mirroring the kernel's bf16 rounding points."""
    bf = lambda t: t.astype(jnp.bfloat16).astype(jnp.float32)
    N = x.shape[0]
    src, dst = edge_index[0], edge_index[1]
    A01 = jnp.zeros((N, N), jnp.float32).at[dst, src].add(1.0)
    deg = A01.sum(axis=1, keepdims=True)
    inv_deg = jnp.where(deg > 0, 1.0 / jnp.maximum(deg, 1.0), 0.0)

    xb = bf(x)
    agg1 = bf((A01 @ xb) * inv_deg)
    z1 = agg1 @ bf(params["w1l"]) + xb @ bf(params["w1r"]) + params["b1"]
    x1 = bf(jax.nn.relu(z1))
    agg2 = bf((A01 @ x1) * inv_deg)
    return agg2 @ bf(params["w2l"]) + x1 @ bf(params["w2r"]) + params["b2"]


if __name__ == "__main__":
    key = jax.random.PRNGKey(0)
    k_x, k_e, k_p = jax.random.split(key, 3)

    N, F_IN, HIDDEN, E = 16, 16, 32, 48
    x = jax.random.normal(k_x, (N, F_IN), jnp.float32)
    edge_index = jax.random.randint(k_e, (2, E), 0, N, jnp.int32)
    params = init_params(k_p, F_IN, HIDDEN)

    out = graphsage_forward(x, edge_index, params)
    out = jax.block_until_ready(out)

    ref = _reference(x, edge_index, params)
    assert out.shape == (N, HIDDEN)
    assert jnp.allclose(out, ref, atol=1e-2, rtol=1e-2), (
        float(jnp.max(jnp.abs(out - ref))))

    print("KERNEL_OK")
</pallas_src>

<mosaic_0001>
module attributes {stable_mosaic.version = 11 : i64} {
  func.func @_sage_layer_kernel(%arg0: i32, %arg1: i32, %arg2: memref<128x128xi8, #tpu.memory_space<vmem>>, %arg3: memref<128x128xbf16, #tpu.memory_space<vmem>>, %arg4: memref<128x128xbf16, #tpu.memory_space<vmem>>, %arg5: memref<128x1xf32, #tpu.memory_space<vmem>>, %arg6: memref<128x128xbf16, #tpu.memory_space<vmem>>, %arg7: memref<128x128xbf16, #tpu.memory_space<vmem>>, %arg8: memref<1x128xf32, #tpu.memory_space<vmem>>, %arg9: memref<128x128xbf16, #tpu.memory_space<vmem>>, %arg10: memref<128x128xf32, #tpu.memory_space<vmem>>) attributes {dimension_semantics = [#tpu.dimension_semantics<parallel>, #tpu.dimension_semantics<arbitrary>], iteration_bounds = array<i64: 1, 1>, scalar_prefetch = 0 : i64, scratch_operands = 1 : i64, tpu.core_type = #tpu.core_type<tc>, window_params = [{transform_indices = @transform_0, window_bounds = array<i64: 128, 128>}, {pipeline_mode = #tpu.pipeline_mode<synchronous>, transform_indices = @transform_1, window_bounds = array<i64: 128, 128>}, {transform_indices = @transform_2, window_bounds = array<i64: 128, 128>}, {transform_indices = @transform_3, window_bounds = array<i64: 128, 1>}, {pipeline_mode = #tpu.pipeline_mode<synchronous>, transform_indices = @transform_4, window_bounds = array<i64: 128, 128>}, {pipeline_mode = #tpu.pipeline_mode<synchronous>, transform_indices = @transform_5, window_bounds = array<i64: 128, 128>}, {pipeline_mode = #tpu.pipeline_mode<synchronous>, transform_indices = @transform_6, window_bounds = array<i64: 1, 128>}, {transform_indices = @transform_7, window_bounds = array<i64: 128, 128>}]} {
    %c0_i32 = arith.constant 0 : i32
    %0 = arith.cmpi eq, %arg1, %c0_i32 : i32
    %1 = arith.extui %0 : i1 to i32
    %c0_i32_0 = arith.constant 0 : i32
    %2 = arith.cmpi ne, %1, %c0_i32_0 : i32
    scf.if %2 {
      %cst_9 = arith.constant 0.000000e+00 : f32
      %16 = vector.broadcast %cst_9 : f32 to vector<128x128xf32>
      %c0_10 = arith.constant 0 : index
      %c0_11 = arith.constant 0 : index
      %17 = vector.load %arg10[%c0_10, %c0_11] : memref<128x128xf32, #tpu.memory_space<vmem>>, vector<128x128xf32>
      tpu.vector_store %arg10[%c0_10, %c0_11], %16 {strides = array<i32>} : memref<128x128xf32, #tpu.memory_space<vmem>>, vector<128x128xf32>,
    } else {
    }
    %c128_i32 = arith.constant 128 : i32
    %3 = arith.muli %arg1, %c128_i32 : i32
    %4 = tpu.assume_multiple %3, 128 : i32
    %5 = arith.index_cast %4 : i32 to index
    %c0 = arith.constant 0 : index
    %6 = vector.load %arg3[%5, %c0] : memref<128x128xbf16, #tpu.memory_space<vmem>>, vector<128x128xbf16>
    %c0_1 = arith.constant 0 : index
    %c0_2 = arith.constant 0 : index
    %7 = vector.load %arg10[%c0_1, %c0_2] : memref<128x128xf32, #tpu.memory_space<vmem>>, vector<128x128xf32>
    %c0_3 = arith.constant 0 : index
    %c0_4 = arith.constant 0 : index
    %8 = vector.load %arg2[%c0_3, %c0_4] : memref<128x128xi8, #tpu.memory_space<vmem>>, vector<128x128xi8>
    %9 = arith.sitofp %8 : vector<128x128xi8> to vector<128x128xbf16>
    %cst = arith.constant dense<0.000000e+00> : vector<128x128xf32>
    %10 = tpu.matmul %9, %6, %cst {dimension_numbers = #tpu.dot_dimension_numbers<[1], [0], [0], [1], [0, 0, 1, 1], [], []>} : vector<128x128xbf16>, vector<128x128xbf16>, vector<128x128xf32> -> vector<128x128xf32>
    %11 = arith.addf %7, %10 : vector<128x128xf32>
    %c0_5 = arith.constant 0 : index
    %c0_6 = arith.constant 0 : index
    %12 = vector.load %arg10[%c0_5, %c0_6] : memref<128x128xf32, #tpu.memory_space<vmem>>, vector<128x128xf32>
    tpu.vector_store %arg10[%c0_5, %c0_6], %11 {strides = array<i32>} : memref<128x128xf32, #tpu.memory_space<vmem>>, vector<128x128xf32>,
    %c0_i32_7 = arith.constant 0 : i32
    %13 = arith.cmpi eq, %arg1, %c0_i32_7 : i32
    %14 = arith.extui %13 : i1 to i32
    %c0_i32_8 = arith.constant 0 : i32
    %15 = arith.cmpi ne, %14, %c0_i32_8 : i32
    scf.if %15 {
      %c0_9 = arith.constant 0 : index
      %c0_10 = arith.constant 0 : index
      %16 = vector.load %arg10[%c0_9, %c0_10] : memref<128x128xf32, #tpu.memory_space<vmem>>, vector<128x128xf32>
      %c0_11 = arith.constant 0 : index
      %c0_12 = arith.constant 0 : index
      %17 = vector.load %arg5[%c0_11, %c0_12] : memref<128x1xf32, #tpu.memory_space<vmem>>, vector<128x1xf32>
      %18 = vector.broadcast %17 : vector<128x1xf32> to vector<128x128xf32>
      %19 = arith.mulf %16, %18 : vector<128x128xf32>
      %20 = arith.truncf %19 : vector<128x128xf32> to vector<128x128xbf16>
      %c0_13 = arith.constant 0 : index
      %c0_14 = arith.constant 0 : index
      %21 = vector.load %arg6[%c0_13, %c0_14] : memref<128x128xbf16, #tpu.memory_space<vmem>>, vector<128x128xbf16>
      %cst_15 = arith.constant dense<0.000000e+00> : vector<128x128xf32>
      %22 = tpu.matmul %20, %21, %cst_15 {dimension_numbers = #tpu.dot_dimension_numbers<[1], [0], [0], [1], [0, 0, 1, 1], [], []>} : vector<128x128xbf16>, vector<128x128xbf16>, vector<128x128xf32> -> vector<128x128xf32>
      %c0_16 = arith.constant 0 : index
      %c0_17 = arith.constant 0 : index
      %23 = vector.load %arg4[%c0_16, %c0_17] : memref<128x128xbf16, #tpu.memory_space<vmem>>, vector<128x128xbf16>
      %c0_18 = arith.constant 0 : index
      %c0_19 = arith.constant 0 : index
      %24 = vector.load %arg7[%c0_18, %c0_19] : memref<128x128xbf16, #tpu.memory_space<vmem>>, vector<128x128xbf16>
      %cst_20 = arith.constant dense<0.000000e+00> : vector<128x128xf32>
      %25 = tpu.matmul %23, %24, %cst_20 {dimension_numbers = #tpu.dot_dimension_numbers<[1], [0], [0], [1], [0, 0, 1, 1], [], []>} : vector<128x128xbf16>, vector<128x128xbf16>, vector<128x128xf32> -> vector<128x128xf32>
      %26 = arith.addf %22, %25 : vector<128x128xf32>
      %c0_21 = arith.constant 0 : index
      %c0_22 = arith.constant 0 : index
      %27 = vector.load %arg8[%c0_21, %c0_22] : memref<1x128xf32, #tpu.memory_space<vmem>>, vector<1x128xf32>
      %28 = vector.broadcast %27 : vector<1x128xf32> to vector<128x128xf32>
      %29 = arith.addf %26, %28 : vector<128x128xf32>
      %cst_23 = arith.constant 0.000000e+00 : f32
      %30 = vector.broadcast %cst_23 : f32 to vector<128x128xf32>
      %31 = arith.maximumf %29, %30 : vector<128x128xf32>
      %32 = arith.truncf %31 : vector<128x128xf32> to vector<128x128xbf16>
      %c0_24 = arith.constant 0 : index
      %c0_25 = arith.constant 0 : index
      %33 = vector.load %arg9[%c0_24, %c0_25] : memref<128x128xbf16, #tpu.memory_space<vmem>>, vector<128x128xbf16>
      tpu.vector_store %arg9[%c0_24, %c0_25], %32 {strides = array<i32>} : memref<128x128xbf16, #tpu.memory_space<vmem>>, vector<128x128xbf16>,
    } else {
    }
    return
  }
  func.func @transform_0(%arg0: i32, %arg1: i32) -> (i32, i32) {
    %c0_i32 = arith.constant 0 : i32
    return %arg0, %arg1 : i32, i32
  }
  func.func @transform_1(%arg0: i32, %arg1: i32) -> (i32, i32) {
    %c0_i32 = arith.constant 0 : i32
    %c0_i32_0 = arith.constant 0 : i32
    %c0_i32_1 = arith.constant 0 : i32
    return %c0_i32, %c0_i32_0 : i32, i32
  }
  func.func @transform_2(%arg0: i32, %arg1: i32) -> (i32, i32) {
    %c0_i32 = arith.constant 0 : i32
    %c0_i32_0 = arith.constant 0 : i32
    return %arg0, %c0_i32 : i32, i32
  }
  func.func @transform_3(%arg0: i32, %arg1: i32) -> (i32, i32) {
    %c0_i32 = arith.constant 0 : i32
    %c0_i32_0 = arith.constant 0 : i32
    return %arg0, %c0_i32 : i32, i32
  }
  func.func @transform_4(%arg0: i32, %arg1: i32) -> (i32, i32) {
    %c0_i32 = arith.constant 0 : i32
    %c0_i32_0 = arith.constant 0 : i32
    %c0_i32_1 = arith.constant 0 : i32
    return %c0_i32, %c0_i32_0 : i32, i32
  }
  func.func @transform_5(%arg0: i32, %arg1: i32) -> (i32, i32) {
    %c0_i32 = arith.constant 0 : i32
    %c0_i32_0 = arith.constant 0 : i32
    %c0_i32_1 = arith.constant 0 : i32
    return %c0_i32, %c0_i32_0 : i32, i32
  }
  func.func @transform_6(%arg0: i32, %arg1: i32) -> (i32, i32) {
    %c0_i32 = arith.constant 0 : i32
    %c0_i32_0 = arith.constant 0 : i32
    %c0_i32_1 = arith.constant 0 : i32
    return %c0_i32, %c0_i32_0 : i32, i32
  }
  func.func @transform_7(%arg0: i32, %arg1: i32) -> (i32, i32) {
    %c0_i32 = arith.constant 0 : i32
    %c0_i32_0 = arith.constant 0 : i32
    return %arg0, %c0_i32 : i32, i32
  }
}

</mosaic_0001>

<bundles_post_ra>
// kernel: tpu_custom_call.1
= control target key start
LH: loop header
LB: loop body
LE: loop exit
PB: predicated region body
PF: predicated region fallthrough
CT: control target
= control target key end

     0   :  { %12 = vsyncpa [#allocation4], 0  ;;  %s1571_s0 = inlined_call_operand.hbm [shape: s8[128,128], index: 0, kind: input, shape index: {}]   ;;  %s1572_s1 = inlined_call_operand.vmem [shape: bf16[128,128], index: 1, kind: input, shape index: {}]   ;;  %s1573_s2 = inlined_call_operand.vmem [shape: bf16[128,128], index: 2, kind: input, shape index: {}]   ;;  %s1574_s3 = inlined_call_operand.vmem [shape: f32[128,1], index: 3, kind: input, shape index: {}]   ;;  %s1575_s4 = inlined_call_operand.hbm [shape: bf16[128,128], index: 4, kind: input, shape index: {}]   ;;  %s1576_s5 = inlined_call_operand.hbm [shape: bf16[128,128], index: 5, kind: input, shape index: {}]   ;;  %s1577_s6 = inlined_call_operand.vmem [shape: f32[1,128], index: 6, kind: input, shape index: {}]   ;;  %s1578_s7 = inlined_call_operand.hbm [shape: bf16[128,128], index: 7, kind: output, shape index: {}]  }
   0x1   :  { %13 = vsyncpa [#allocation7], 0 }
   0x2   :  { %14 = vsyncpa [#allocation5], 0  ;;  %s1380_s24 = smov [#allocation6]  }
   0x3   :  { %s38_s25 = sshll.u32 %s1380_s24, 4  ;;  %s39_s25 = int_to_ptr.vmem [resolvable:$true] %s38_s25 }
   0x4   :  { %s1302_s26 = scalar_lea.vmem %s39_s25, 1024  ;;  %p1307_p1 = scmp.lt.s32.totalorder %s39_s25, %s39_s25 }
   0x5   :  { %p1303_p0 = scmp.ne.s32.totalorder %s39_s25, %s1302_s26  ;;  %p1308_p2 = scmp.lt.s32.totalorder %s1302_s26, %s1302_s26 }
   0x7   :  { %p1309_p3 = por %p1308_p2, %p1307_p1 }
   0x9   :  { %p1310_p4 = pnand %p1309_p3, %p1303_p0 }
   0xb   :  { %1313 = shalt.err (!%p1310_p4)
}
   0xc   :  { %s1381_s27 = smov 64   ;;  %s1382_s28 = smov 4  }
   0xd   :  { %44 = dma.hbm_to_vmem [thread:$0]  %s1575_s4, 1024, %s39_s25, [#allocation7], %s1381_s27, %s1381_s27, %s1382_s28  }
   0xe   :  { %s1383_s8 = smov [#allocation3]  }
   0xf   :  { %s20_s9 = sshll.u32 %s1383_s8, 4  ;;  %s21_s9 = int_to_ptr.vmem [resolvable:$true] %s20_s9 }
  0x10   :  { %s1322_s10 = scalar_lea.vmem %s21_s9, 512  ;;  %p1327_p6 = scmp.lt.s32.totalorder %s21_s9, %s21_s9 }
  0x11   :  { %p1323_p5 = scmp.ne.s32.totalorder %s21_s9, %s1322_s10  ;;  %p1328_p7 = scmp.lt.s32.totalorder %s1322_s10, %s1322_s10 }
  0x13   :  { %p1329_p8 = por %p1328_p7, %p1327_p6 }
  0x15   :  { %p1330_p9 = pnand %p1329_p8, %p1323_p5 }
  0x17   :  { %1333 = shalt.err (!%p1330_p9)
}
  0x18   :  { %s1384_s11 = smov 128   ;;  %s1385_s12 = smov 8  }
  0x19   :  { %26 = dma.hbm_to_vmem [thread:$0]  %s1571_s0, 512, %s21_s9, [#allocation4], %s1384_s11, %s1384_s11, %s1385_s12  }
  0x1a   :  { %s1386_s15 = smov [#allocation8]  }
  0x1b   :  { %s50_s16 = sshll.u32 %s1386_s15, 4  ;;  %s51_s16 = int_to_ptr.vmem [resolvable:$true] %s50_s16 }
  0x1c   :  { %s1342_s4 = scalar_lea.vmem %s51_s16, 1024  ;;  %p1347_p11 = scmp.lt.s32.totalorder %s51_s16, %s51_s16 }
  0x1d   :  { %p1343_p10 = scmp.ne.s32.totalorder %s51_s16, %s1342_s4  ;;  %p1348_p12 = scmp.lt.s32.totalorder %s1342_s4, %s1342_s4 }
  0x1f   :  { %p1349_p13 = por %p1348_p12, %p1347_p11 }
  0x21   :  { %p1350_p0 = pnand %p1349_p13, %p1343_p10 }
  0x23   :  { %1353 = shalt.err (!%p1350_p0)
}
  0x24   :  { %56 = dma.hbm_to_vmem [thread:$0]  %s1576_s5, 1024, %s51_s16, [#allocation7], %s1381_s27, %s1381_s27, %s1382_s28  }
  0x25   :  { %1374 = dma.done.wait [#allocation4], 512  }
  0x26   :  { %1375 = vsyncadd [#allocation4], 4294966784 }
  0x27   :  { %1376 = dma.done.wait [#allocation7], 2048  }
  0x28   :  { %1377 = vsyncadd [#allocation7], 4294965248  ;;  %v1387_v0 = vmov 0   ;;  %v1262_v1 = vld [vmem:[%s1572_s1 + $0x38] sm:$0xff]   ;;  %v1263_v2 = vld [vmem:[%s1572_s1 + $0x30] sm:$0xff]  }
  0x29   :  { %1261 = vset.pattern.permute.xlu1 %v1387_v0  ;;  %1260 = vset.pattern.permute.xlu0 %v1387_v0  ;;  %v1264_v3 = vld [vmem:[%s1572_s1 + $0x28] sm:$0xff]   ;;  %v1265_v4 = vld [vmem:[%s1572_s1 + $0x20] sm:$0xff]   ;;  %v1266_v11 = vld [vmem:[%s1572_s1 + $0x18] sm:$0xff]  }
  0x2a   :  { %1139 = vmatprep.subr.bf16.mxu0 %v1262_v1  ;;  %v1456_v5 = vld [vmem:[#allocation3] sm:$0xff]  ;;  %v343_v9 = vld [vmem:[%s1574_s3 + $0x48] sm:$0xff]  ;;  %v1267_v12 = vld [vmem:[%s1572_s1 + $0x10] sm:$0xff]  }
  0x2b   :  { %1140 = vmatpush3.bf16.msra.mxu0 %v1262_v1  ;;  %v130_v6 = vunpack.c.l.s8.bf16 %v1456_v5  ;;  %v342_v7 = vld [vmem:[%s1574_s3 + $0x40] sm:$0xff]  ;;  %v335_v10 = vld [vmem:[%s1574_s3 + $0x8] sm:$0xff]  ;;  %v337_v13 = vld [vmem:[%s1574_s3 + $0x18] sm:$0xff]  ;;  %v131_v32 = vunpack.c.h.s8.bf16 %v1456_v5 }
  0x2c   :  { %1141 = vmatprep.subr.bf16.mxu0 %v1263_v2  ;;  %v334_v8 = vld [vmem:[%s1574_s3] sm:$0xff]  ;;  %392 = vperm.xlu1 %1261, %v342_v7   ;;  %v336_v14 = vld [vmem:[%s1574_s3 + $0x10] sm:$0xff]  ;;  %v1270_v15 = vld [vmem:[#allocation8 + $0x38] sm:$0xff]  }
  0x2d   :  { %352 = vperm.xlu0 %1260, %v334_v8   ;;  %1155 = vmatprep.mubr.bf16.mxu0 %v130_v6  ;;  %v1271_v16 = vld [vmem:[#allocation8 + $0x30] sm:$0xff]   ;;  %v1268_v17 = vld [vmem:[%s1572_s1 + $0x8] sm:$0xff]   ;;  %v345_v18 = vld [vmem:[%s1574_s3 + $0x58] sm:$0xff] }
  0x2e   :  { %1171 = vmatprep.subr.bf16.mxu1 %v1270_v15  ;;  %v344_v19 = vld [vmem:[%s1574_s3 + $0x50] sm:$0xff]  ;;  %v1272_v20 = vld [vmem:[#allocation8 + $0x28] sm:$0xff]   ;;  %v1269_v21 = vld [vmem:[%s1572_s1] sm:$0xff]  }
  0x2f   :  { %1142 = vmatpush3.bf16.msra.mxu0 %v1263_v2  ;;  %1172 = vmatpush3.bf16.msra.mxu1 %v1270_v15  ;;  %v339_v22 = vld [vmem:[%s1574_s3 + $0x28] sm:$0xff]  ;;  %v338_v23 = vld [vmem:[%s1574_s3 + $0x20] sm:$0xff]  ;;  %v1274_v29 = vld [vmem:[#allocation8 + $0x18] sm:$0xff]  }
  0x30   :  { %1143 = vmatprep.subr.bf16.mxu0 %v1264_v3  ;;  %397 = vperm.xlu1 %1261, %v343_v9   ;;  %v1273_v24 = vld [vmem:[#allocation8 + $0x20] sm:$0xff]   ;;  %v347_v25 = vld [vmem:[%s1574_s3 + $0x68] sm:$0xff]  ;;  %v1276_v30 = vld [vmem:[#allocation6 + $0x38] sm:$0xff]  }
  0x31   :  { %357 = vperm.xlu0 %1260, %v335_v10   ;;  %1173 = vmatprep.subr.bf16.mxu1 %v1271_v16  ;;  %v346_v26 = vld [vmem:[%s1574_s3 + $0x60] sm:$0xff]  ;;  %v127_v27 = vld [vmem:[#allocation3 + $0x8] sm:$0xff]  ;;  %v341_v31 = vld [vmem:[%s1574_s3 + $0x38] sm:$0xff] }
  0x32   :  { %v1281_v28 = vld [vmem:[%s1573_s2] sm:$0xff]   ;;  %v340_v33 = vld [vmem:[%s1574_s3 + $0x30] sm:$0xff]  ;;  %v132_v34 = vunpack.c.l.s8.bf16 %v127_v27  ;;  %v349_v37 = vld [vmem:[%s1574_s3 + $0x78] sm:$0xff]  ;;  %v133_v42 = vunpack.c.h.s8.bf16 %v127_v27 }
  0x33   :  { %1144 = vmatpush3.bf16.msra.mxu0 %v1264_v3  ;;  %1174 = vmatpush3.bf16.msra.mxu1 %v1271_v16  ;;  %v1275_v35 = vld [vmem:[#allocation8 + $0x10] sm:$0xff]   ;;  %v1277_v40 = vld [vmem:[#allocation8 + $0x8] sm:$0xff]   ;;  %v1279_v44 = vld [vmem:[#allocation8] sm:$0xff]  }
  0x34   :  { %1145 = vmatprep.subr.bf16.mxu0 %v1265_v4  ;;  %367 = vperm.xlu1 %1261, %v337_v13   ;;  %v1278_v36 = vld [vmem:[#allocation6 + $0x30] sm:$0xff]   ;;  %v1280_v41 = vld [vmem:[#allocation6 + $0x28] sm:$0xff]   ;;  %v1283_v45 = vld [vmem:[#allocation6 + $0x20] sm:$0xff]  }
  0x35   :  { %362 = vperm.xlu0 %1260, %v336_v14   ;;  %1175 = vmatprep.subr.bf16.mxu1 %v1272_v20  ;;  %v128_v38 = vld [vmem:[#allocation3 + $0x10] sm:$0xff]  ;;  %v129_v46 = vld [vmem:[#allocation3 + $0x18] sm:$0xff]  ;;  %v1282_v50 = vld [vmem:[%s1573_s2 + $0x8] sm:$0xff]  }
  0x36   :  { %1187 = vmatprep.mubr.bf16.mxu1 %v1281_v28  ;;  %v348_v39 = vld [vmem:[%s1574_s3 + $0x70] sm:$0xff]  ;;  %v134_v43 = vunpack.c.l.s8.bf16 %v128_v38  ;;  %v1284_v47 = vld [vmem:[#allocation6 + $0x18] sm:$0xff]   ;;  %v135_v48 = vunpack.c.h.s8.bf16 %v128_v38  ;;  %v136_v49 = vunpack.c.l.s8.bf16 %v129_v46  ;;  %v137_v52 = vunpack.c.h.s8.bf16 %v129_v46  ;;  %v1288_v55 = vld [vmem:[#allocation6 + $0x8] sm:$0xff]  }
  0x37   :  { %1146 = vmatpush3.bf16.msra.mxu0 %v1265_v4  ;;  %1176 = vmatpush3.bf16.msra.mxu1 %v1272_v20  ;;  %v1285_v51 = vld [vmem:[%s1573_s2 + $0x10] sm:$0xff]   ;;  %v1286_v53 = vld [vmem:[%s1573_s2 + $0x18] sm:$0xff]   ;;  %v1289_v56 = vld [vmem:[%s1573_s2 + $0x20] sm:$0xff]  }
  0x38   :  { %1147 = vmatprep.subr.bf16.mxu0 %v1266_v11  ;;  %407 = vperm.xlu1 %1261, %v345_v18   ;;  %v1287_v54 = vld [vmem:[#allocation6 + $0x10] sm:$0xff]   ;;  %v1290_v57 = vld [vmem:[%s1573_s2 + $0x28] sm:$0xff]   ;;  %v1291_v58 = vld [vmem:[#allocation6] sm:$0xff]  }
  0x39   :  { %402 = vperm.xlu0 %1260, %v344_v19   ;;  %1177 = vmatprep.subr.bf16.mxu1 %v1273_v24  ;;  %v1292_v59 = vld [vmem:[%s1573_s2 + $0x30] sm:$0xff]   ;;  %v1293_v60 = vld [vmem:[%s1573_s2 + $0x38] sm:$0xff]  }
  0x3b   :  { %1148 = vmatpush3.bf16.msra.mxu0 %v1266_v11  ;;  %1178 = vmatpush3.bf16.msra.mxu1 %v1273_v24 }
  0x3c   :  { %1149 = vmatprep.subr.bf16.mxu0 %v1267_v12  ;;  %377 = vperm.xlu1 %1261, %v339_v22  }
  0x3d   :  { %372 = vperm.xlu0 %1260, %v338_v23   ;;  %1179 = vmatprep.subr.bf16.mxu1 %v1274_v29 }
  0x3f   :  { %1150 = vmatpush3.bf16.msra.mxu0 %v1267_v12  ;;  %1180 = vmatpush3.bf16.msra.mxu1 %v1274_v29 }
  0x40   :  { %1151 = vmatprep.subr.bf16.mxu0 %v1268_v17  ;;  %417 = vperm.xlu1 %1261, %v347_v25  }
  0x41   :  { %412 = vperm.xlu0 %1260, %v346_v26   ;;  %1181 = vmatprep.subr.bf16.mxu1 %v1275_v35 }
  0x43   :  { %1152 = vmatpush3.bf16.msra.mxu0 %v1268_v17  ;;  %1182 = vmatpush3.bf16.msra.mxu1 %v1275_v35 }
  0x44   :  { %1153 = vmatprep.subr.bf16.mxu0 %v1269_v21  ;;  %387 = vperm.xlu1 %1261, %v341_v31  }
  0x45   :  { %382 = vperm.xlu0 %1260, %v340_v33   ;;  %1183 = vmatprep.subr.bf16.mxu1 %v1277_v40 }
  0x47   :  { %1154 = vmatpush3.bf16.msra.mxu0 %v1269_v21  ;;  %1184 = vmatpush3.bf16.msra.mxu1 %v1277_v40 }
  0x48   :  { %1203 = vmatprep.subr.bf16.mxu0 %v1276_v30  ;;  %427 = vperm.xlu1 %1261, %v349_v37  }
  0x49   :  { %422 = vperm.xlu0 %1260, %v348_v39   ;;  %1185 = vmatprep.subr.bf16.mxu1 %v1279_v44 }
  0x4a   :  { %1156 = vmatmul.mubr.bf16.vlgmr.msra.gmra.mxu0 %v131_v32 }
  0x4b   :  { %1159 = vmatprep.mubr.bf16.mxu0 %v132_v34  ;;  %1204 = vmatpush3.bf16.msra.mxu0 %v1276_v30 }
  0x4c   :  { %1205 = vmatprep.subr.bf16.mxu0 %v1278_v36  ;;  %1186 = vmatpush3.bf16.msra.mxu1 %v1279_v44 }
  0x4d   :  { %1235 = vmatprep.subr.bf16.mxu1 %v1276_v30 }
  0x4f   :  { %1206 = vmatpush3.bf16.msra.mxu0 %v1278_v36  ;;  %1188 = vmatmul.mubr.bf16.vlgmr.msra.gmra.mxu1 %v1282_v50 }
  0x50   :  { %1207 = vmatprep.subr.bf16.mxu0 %v1280_v41  ;;  %1243 = vmatpush3.bf16.msra.mxu1 %v1276_v30 }
  0x51   :  { %1191 = vmatprep.mubr.bf16.mxu1 %v1285_v51  ;;  %1236 = vmatprep.subr.bf16.mxu1 %v1278_v36 }
  0x52   :  { %1160 = vmatmul.mubr.bf16.gmra.mxu0 %v133_v42 }
  0x53   :  { %1163 = vmatprep.mubr.bf16.mxu0 %v134_v43  ;;  %1208 = vmatpush3.bf16.msra.mxu0 %v1280_v41 }
  0x54   :  { %1209 = vmatprep.subr.bf16.mxu0 %v1283_v45  ;;  %1244 = vmatpush3.bf16.msra.mxu1 %v1278_v36 }
  0x55   :  { %1237 = vmatprep.subr.bf16.mxu1 %v1280_v41 }
  0x57   :  { %1210 = vmatpush3.bf16.msra.mxu0 %v1283_v45  ;;  %1192 = vmatmul.mubr.bf16.gmra.mxu1 %v1286_v53 }
  0x58   :  { %1211 = vmatprep.subr.bf16.mxu0 %v1284_v47  ;;  %1245 = vmatpush3.bf16.msra.mxu1 %v1280_v41 }
  0x59   :  { %1238 = vmatprep.subr.bf16.mxu1 %v1283_v45  ;;  %1195 = vmatprep.mubr.bf16.mxu1 %v1289_v56 }
  0x5a   :  { %1164 = vmatmul.mubr.bf16.gmra.mxu0 %v135_v48 }
  0x5b   :  { %1167 = vmatprep.mubr.bf16.mxu0 %v136_v49  ;;  %1212 = vmatpush3.bf16.msra.mxu0 %v1284_v47 }
  0x5c   :  { %1246 = vmatpush3.bf16.msra.mxu1 %v1283_v45  ;;  %1213 = vmatprep.subr.bf16.mxu0 %v1287_v54 }
  0x5d   :  { %1239 = vmatprep.subr.bf16.mxu1 %v1284_v47 }
  0x5f   :  { %1214 = vmatpush3.bf16.msra.mxu0 %v1287_v54  ;;  %1196 = vmatmul.mubr.bf16.gmra.mxu1 %v1290_v57 }
  0x60   :  { %1247 = vmatpush3.bf16.msra.mxu1 %v1284_v47  ;;  %1215 = vmatprep.subr.bf16.mxu0 %v1288_v55 }
  0x61   :  { %1240 = vmatprep.subr.bf16.mxu1 %v1287_v54  ;;  %1199 = vmatprep.mubr.bf16.mxu1 %v1292_v59 }
  0x62   :  { %1168 = vmatmul.mubr.bf16.gmra.mxu0 %v137_v52 }
  0x63   :  { %1216 = vmatpush3.bf16.msra.mxu0 %v1288_v55 }
  0x64   :  { %1248 = vmatpush3.bf16.msra.mxu1 %v1287_v54  ;;  %1217 = vmatprep.subr.bf16.mxu0 %v1291_v58 }
  0x65   :  { %1241 = vmatprep.subr.bf16.mxu1 %v1288_v55 }
  0x67   :  { %1218 = vmatpush3.bf16.msra.mxu0 %v1291_v58  ;;  %1200 = vmatmul.mubr.bf16.gmra.mxu1 %v1293_v60 }
  0x68   :  { %1249 = vmatpush3.bf16.msra.mxu1 %v1288_v55 }
  0x69   :  { %1242 = vmatprep.subr.bf16.mxu1 %v1291_v58 }
  0x6c   :  { %1250 = vmatpush3.bf16.msra.mxu1 %v1291_v58 }
  0xa7   :  { %v393_v61 = vpop.permute.xlu1 %392 }
  0xa8   :  { %v353_v62 = vpop.permute.xlu0 %352 }
  0xab   :  { %v398_v63 = vpop.permute.xlu1 %397 }
  0xac   :  { %v358_v0 = vpop.permute.xlu0 %357 }
  0xaf   :  { %v368_v1 = vpop.permute.xlu1 %367 }
  0xb0   :  { %v363_v2 = vpop.permute.xlu0 %362 }
  0xb3   :  { %v408_v3 = vpop.permute.xlu1 %407 }
  0xb4   :  { %v403_v4 = vpop.permute.xlu0 %402 }
  0xb7   :  { %v378_v6 = vpop.permute.xlu1 %377 }
  0xb8   :  { %v373_v8 = vpop.permute.xlu0 %372 }
  0xbb   :  { %v418_v12 = vpop.permute.xlu1 %417 }
  0xbc   :  { %v413_v17 = vpop.permute.xlu0 %412 }
  0xbf   :  { %v388_v22 = vpop.permute.xlu1 %387 }
  0xc0   :  { %v383_v25 = vpop.permute.xlu0 %382 }
  0xc3   :  { %v428_v44 = vpop.permute.xlu1 %427 }
  0xc4   :  { %v423_v47 = vpop.permute.xlu0 %422 }
 0x10a   :  { %v1157_v5 = vpop.f32.mrf.mxu0 }
 0x10b   :  { %v432_v15 = vmul.f32 %v1157_v5, %v363_v2 }
 0x10c   :  { %v220_v7 = vpop.f32.mrf.mxu0 }
 0x10d   :  { %v430_v13 = vmul.f32 %v353_v62, %v220_v7 }
 0x10e   :  { %v1158_v9 = vpop.f32.mrf.mxu0 }
 0x10f   :  { %v433_v10 = vmul.f32 %v1158_v9, %v368_v1  ;;  %v1189_v53 = vpop.f32.mrf.mxu1 }
 0x110   :  { %v223_v11 = vpop.f32.mrf.mxu0 }
 0x111   :  { %v431_v14 = vmul.f32 %v358_v0, %v223_v11  ;;  %v447_v19 = vpack.c.bf16 %v433_v10, %v432_v15  ;;  %v632_v54 = vpop.f32.mrf.mxu1 }
 0x112   :  { %v1161_v16 = vpop.f32.mrf.mxu0 }
 0x113   :  { %v446_v18 = vpack.c.bf16 %v431_v14, %v430_v13  ;;  %v436_v28 = vmul.f32 %v1161_v16, %v383_v25  ;;  %v1190_v55 = vpop.f32.mrf.mxu1 }
 0x114   :  { %v236_v20 = vpop.f32.mrf.mxu0 }
 0x115   :  { %1219 = vmatprep.mubr.bf16.mxu0 %v446_v18  ;;  %v434_v26 = vmul.f32 %v373_v8, %v236_v20  ;;  %v635_v56 = vpop.f32.mrf.mxu1 }
 0x116   :  { %v1162_v21 = vpop.f32.mrf.mxu0  ;;  %1220 = vmatmul.mubr.bf16.vlgmr.msra.gmra.mxu0 %v447_v19 }
 0x117   :  { %v437_v23 = vmul.f32 %v1162_v21, %v388_v22  ;;  %v1193_v57 = vpop.f32.mrf.mxu1 }
 0x118   :  { %v239_v24 = vpop.f32.mrf.mxu0 }
 0x119   :  { %v435_v27 = vmul.f32 %v378_v6, %v239_v24  ;;  %v449_v31 = vpack.c.bf16 %v437_v23, %v436_v28  ;;  %v648_v58 = vpop.f32.mrf.mxu1 }
 0x11a   :  { %v1165_v29 = vpop.f32.mrf.mxu0 }
 0x11b   :  { %v448_v30 = vpack.c.bf16 %v435_v27, %v434_v26  ;;  %v440_v38 = vmul.f32 %v1165_v29, %v403_v4  ;;  %v1194_v59 = vpop.f32.mrf.mxu1 }
 0x11c   :  { %v252_v32 = vpop.f32.mrf.mxu0 }
 0x11d   :  { %1223 = vmatprep.mubr.bf16.mxu0 %v448_v30  ;;  %v438_v36 = vmul.f32 %v393_v61, %v252_v32  ;;  %v651_v60 = vpop.f32.mrf.mxu1 }
 0x11e   :  { %v1166_v33 = vpop.f32.mrf.mxu0  ;;  %1224 = vmatmul.mubr.bf16.gmra.mxu0 %v449_v31 }
 0x11f   :  { %v441_v34 = vmul.f32 %v1166_v33, %v408_v3  ;;  %v1197_v61 = vpop.f32.mrf.mxu1  ;;  %v1547_v3 = vld [vmem:[%s1577_s6] ss:$0 sm:$0xff]  ;;  %s1388_s6 = smov [#allocation9]  }
 0x120   :  { %v255_v35 = vpop.f32.mrf.mxu0  ;;  %s964_s10 = sshll.u32 %s1388_s6, 4  ;;  %s965_s10 = int_to_ptr.vmem [resolvable:$true] %s964_s10 }
 0x121   :  { %v439_v37 = vmul.f32 %v398_v63, %v255_v35  ;;  %v451_v41 = vpack.c.bf16 %v441_v34, %v440_v38  ;;  %v664_v62 = vpop.f32.mrf.mxu1  ;;  %s1354_s11 = scalar_lea.vmem %s965_s10, 1024  ;;  %p1359_p2 = scmp.lt.s32.totalorder %s965_s10, %s965_s10 }
 0x122   :  { %v1169_v39 = vpop.f32.mrf.mxu0  ;;  %p1355_p1 = scmp.ne.s32.totalorder %s965_s10, %s1354_s11  ;;  %p1360_p3 = scmp.lt.s32.totalorder %s1354_s11, %s1354_s11 }
 0x123   :  { %v450_v40 = vpack.c.bf16 %v439_v37, %v438_v36  ;;  %v444_v50 = vmul.f32 %v1169_v39, %v423_v47  ;;  %v1198_v63 = vpop.f32.mrf.mxu1 }
 0x124   :  { %v268_v42 = vpop.f32.mrf.mxu0  ;;  %p1361_p4 = por %p1360_p3, %p1359_p2 }
 0x125   :  { %1227 = vmatprep.mubr.bf16.mxu1 %v450_v40  ;;  %v442_v48 = vmul.f32 %v413_v17, %v268_v42  ;;  %v667_v0 = vpop.f32.mrf.mxu1 }
 0x126   :  { %v1170_v43 = vpop.f32.mrf.mxu0  ;;  %1228 = vmatmul.mubr.bf16.vlgmr.msra.gmra.mxu1 %v451_v41  ;;  %p1362_p5 = pnand %p1361_p4, %p1355_p1 }
 0x127   :  { %v445_v45 = vmul.f32 %v1170_v43, %v428_v44  ;;  %v1201_v4 = vpop.f32.mrf.mxu1 }
 0x128   :  { %v271_v46 = vpop.f32.mrf.mxu0 }
 0x129   :  { %v443_v49 = vmul.f32 %v418_v12, %v271_v46  ;;  %v453_v52 = vpack.c.bf16 %v445_v45, %v444_v50  ;;  %v680_v10 = vpop.f32.mrf.mxu1 }
 0x12b   :  { %v452_v51 = vpack.c.bf16 %v443_v49, %v442_v48  ;;  %v1202_v20 = vpop.f32.mrf.mxu1 }
 0x12d   :  { %1231 = vmatprep.mubr.bf16.mxu1 %v452_v51  ;;  %v683_v30 = vpop.f32.mrf.mxu1 }
 0x12e   :  { %1232 = vmatmul.mubr.bf16.gmra.mxu1 %v453_v52 }
 0x1d6   :  { %v1221_v1 = vpop.f32.mrf.mxu0 }
 0x1d7   :  { %v786_v2 = vadd.f32 %v1221_v1, %v1189_v53 }
 0x1d8   :  { %v777_v5 = vpop.f32.mrf.mxu0 }
 0x1d9   :  { %v778_v6 = vadd.f32 %v777_v5, %v632_v54  ;;  %v849_v8 = vadd.f32 %v1547_v3, %v786_v2 }
 0x1da   :  { %v1222_v7 = vpop.f32.mrf.mxu0 }
 0x1db   :  { %v789_v9 = vadd.f32 %v1222_v7, %v1190_v55  ;;  %v847_v12 = vadd.f32 %v1547_v3, %v778_v6  ;;  %v865_v16 = vmax.f32 %v849_v8, 0.0 }
 0x1dc   :  { %v780_v11 = vpop.f32.mrf.mxu0 }
 0x1dd   :  { %v850_v13 = vadd.f32 %v1547_v3, %v789_v9  ;;  %v781_v14 = vadd.f32 %v780_v11, %v635_v56  ;;  %v863_v22 = vmax.f32 %v847_v12, 0.0 }
 0x1de   :  { %v1225_v15 = vpop.f32.mrf.mxu0 }
 0x1df   :  { %v866_v17 = vmax.f32 %v850_v13, 0.0  ;;  %v848_v18 = vadd.f32 %v1547_v3, %v781_v14  ;;  %v802_v19 = vadd.f32 %v1225_v15, %v1193_v57 }
 0x1e0   :  { %v793_v21 = vpop.f32.mrf.mxu0 }
 0x1e1   :  { %v1052_v23 = vpack.c.bf16 %v866_v17, %v865_v16  ;;  %v864_v24 = vmax.f32 %v848_v18, 0.0  ;;  %v794_v25 = vadd.f32 %v793_v21, %v648_v58  ;;  %v853_v28 = vadd.f32 %v1547_v3, %v802_v19 }
 0x1e2   :  { %v1226_v26 = vpop.f32.mrf.mxu0 }
 0x1e3   :  { %1084 = vst [vmem:[#allocation9 + $0x8] sm:$0xff] %v1052_v23   ;;  %v1047_v27 = vpack.c.bf16 %v864_v24, %v863_v22  ;;  %v805_v29 = vadd.f32 %v1226_v26, %v1194_v59  ;;  %v851_v32 = vadd.f32 %v1547_v3, %v794_v25  ;;  %v869_v36 = vmax.f32 %v853_v28, 0.0 }
 0x1e4   :  { %v796_v31 = vpop.f32.mrf.mxu0 }
 0x1e5   :  { %1048 = vst [vmem:[#allocation9] sm:$0xff] %v1047_v27   ;;  %v854_v33 = vadd.f32 %v1547_v3, %v805_v29  ;;  %v797_v34 = vadd.f32 %v796_v31, %v651_v60  ;;  %v867_v41 = vmax.f32 %v851_v32, 0.0 }
 0x1e6   :  { %v1229_v35 = vpop.f32.mrf.mxu1 }
 0x1e7   :  { %v870_v37 = vmax.f32 %v854_v33, 0.0  ;;  %v852_v38 = vadd.f32 %v1547_v3, %v797_v34  ;;  %v818_v39 = vadd.f32 %v1229_v35, %v1197_v61 }
 0x1e8   :  { %v809_v40 = vpop.f32.mrf.mxu1 }
 0x1e9   :  { %v1062_v42 = vpack.c.bf16 %v870_v37, %v869_v36  ;;  %v868_v43 = vmax.f32 %v852_v38, 0.0  ;;  %v810_v44 = vadd.f32 %v809_v40, %v664_v62  ;;  %v857_v47 = vadd.f32 %v1547_v3, %v818_v39 }
 0x1ea   :  { %v1230_v45 = vpop.f32.mrf.mxu1 }
 0x1eb   :  { %1086 = vst [vmem:[#allocation9 + $0x18] sm:$0xff] %v1062_v42   ;;  %v1057_v46 = vpack.c.bf16 %v868_v43, %v867_v41  ;;  %v821_v48 = vadd.f32 %v1230_v45, %v1198_v63  ;;  %v855_v50 = vadd.f32 %v1547_v3, %v810_v44  ;;  %v873_v54 = vmax.f32 %v857_v47, 0.0 }
 0x1ec   :  { %v812_v49 = vpop.f32.mrf.mxu1 }
 0x1ed   :  { %1085 = vst [vmem:[#allocation9 + $0x10] sm:$0xff] %v1057_v46   ;;  %v858_v51 = vadd.f32 %v1547_v3, %v821_v48  ;;  %v813_v52 = vadd.f32 %v812_v49, %v667_v0  ;;  %v871_v59 = vmax.f32 %v855_v50, 0.0 }
 0x1ee   :  { %v1233_v53 = vpop.f32.mrf.mxu1 }
 0x1ef   :  { %v874_v55 = vmax.f32 %v858_v51, 0.0  ;;  %v856_v56 = vadd.f32 %v1547_v3, %v813_v52  ;;  %v834_v57 = vadd.f32 %v1233_v53, %v1201_v4 }
 0x1f0   :  { %v825_v58 = vpop.f32.mrf.mxu1 }
 0x1f1   :  { %v1072_v60 = vpack.c.bf16 %v874_v55, %v873_v54  ;;  %v872_v61 = vmax.f32 %v856_v56, 0.0  ;;  %v826_v62 = vadd.f32 %v825_v58, %v680_v10  ;;  %v861_v2 = vadd.f32 %v1547_v3, %v834_v57 }
 0x1f2   :  { %v1234_v1 = vpop.f32.mrf.mxu1 }
 0x1f3   :  { %1088 = vst [vmem:[#allocation9 + $0x28] sm:$0xff] %v1072_v60   ;;  %v1067_v63 = vpack.c.bf16 %v872_v61, %v871_v59  ;;  %v837_v5 = vadd.f32 %v1234_v1, %v1202_v20  ;;  %v859_v0 = vadd.f32 %v1547_v3, %v826_v62  ;;  %v877_v9 = vmax.f32 %v861_v2, 0.0 }
 0x1f4   :  { %v828_v6 = vpop.f32.mrf.mxu1 }
 0x1f5   :  { %1087 = vst [vmem:[#allocation9 + $0x20] sm:$0xff] %v1067_v63   ;;  %v862_v7 = vadd.f32 %v1547_v3, %v837_v5  ;;  %v829_v8 = vadd.f32 %v828_v6, %v683_v30  ;;  %v875_v10 = vmax.f32 %v859_v0, 0.0 }
 0x1f7   :  { %v878_v4 = vmax.f32 %v862_v7, 0.0  ;;  %v860_v11 = vadd.f32 %v1547_v3, %v829_v8 }
 0x1f9   :  { %v1082_v12 = vpack.c.bf16 %v878_v4, %v877_v9  ;;  %v876_v13 = vmax.f32 %v860_v11, 0.0 }
 0x1fb   :  { %1090 = vst [vmem:[#allocation9 + $0x38] sm:$0xff] %v1082_v12   ;;  %v1077_v14 = vpack.c.bf16 %v876_v13, %v875_v10 }
 0x1fd   :  { %1089 = vst [vmem:[#allocation9 + $0x30] sm:$0xff] %v1077_v14  }
 0x1fe   :  { %1365 = shalt.err (!%p1362_p5)
}
 0x1ff   :  { %970 = dma.vmem_to_hbm [thread:$0]  %s965_s10, 1024, %s1578_s7, [#allocation5], %s1381_s27, %s1381_s27, %s1382_s28  }
 0x200   :  { %1378 = dma.done.wait [#allocation5], 1024  }
 0x201   :  { %1379 = vsyncadd [#allocation5], 4294966272 }
 0x202   :  { %974 = vsyncpa [#allocation4], 1 }
 0x203   :  { %975 = vsyncpa [#allocation7], 1 }
 0x204   :  { %976 = vsyncpa [#allocation5], 1 }

</bundles_post_ra>
